<compile_context>
chip_gen: v6e
topology: v6e:2x2x1
jax: 0.10.0
libtpu: 0.0.40
codegen_flags: <defaults>
</compile_context>

<pallas_src>
import functools

import jax
import jax.numpy as jnp
from jax import lax
from jax.experimental import pallas as pl
from jax.experimental.pallas import tpu as pltpu


def lin_kernel(x_ref, params_ref, o_ref, *, eps):
    # x_ref: (B, C, HW) block of B samples; params_ref: (3, C, 1) = [rho, gamma, beta]
    _, c, hw = x_ref.shape

    rho = params_ref[0]      # (C, 1) f32
    gamma = params_ref[1]    # (C, 1) f32
    beta = params_ref[2]     # (C, 1) f32

    # ---- pass 1: per-(sample, channel) means (stream x, upcast per-vreg) ----
    in_mean = jnp.mean(x_ref[...].astype(jnp.float32), axis=2, keepdims=True)   # (B, C, 1)

    # ---- pass 2: centered sum of squares (exact; no E[x^2]-mean^2 trick) ----
    in_ssd = jnp.sum(
        jnp.square(x_ref[...].astype(jnp.float32) - in_mean), axis=2, keepdims=True
    )                                                                            # (B, C, 1)
    in_var = in_ssd / jnp.float32(hw - 1)            # unbiased, matches torch.var

    # ---- layer-norm stats composed exactly from the per-channel partials ----
    ln_mean = jnp.mean(in_mean, axis=1, keepdims=True)                           # (B, 1, 1)
    ln_ssd = jnp.sum(in_ssd + hw * jnp.square(in_mean - ln_mean),
                     axis=1, keepdims=True)                                      # (B, 1, 1)
    ln_var = ln_ssd / jnp.float32(c * hw - 1)

    # ---- collapse norm + rho-mix + gamma/beta into per-channel scale/bias ----
    inv_in = lax.rsqrt(in_var + eps)                                             # (B, C, 1)
    inv_ln = lax.rsqrt(ln_var + eps)                                             # (B, 1, 1)
    mix_scale = rho * inv_in + (1.0 - rho) * inv_ln                              # (B, C, 1)
    mix_shift = rho * in_mean * inv_in + (1.0 - rho) * ln_mean * inv_ln          # (B, C, 1)
    scale = gamma * mix_scale                                                    # (B, C, 1)
    bias = beta - gamma * mix_shift                                              # (B, C, 1)

    # ---- pass 3: single broadcasted FMA over the slab, streaming from x_ref ----
    o_ref[...] = (x_ref[...].astype(jnp.float32) * scale + bias).astype(o_ref.dtype)


def _tpu_caps():
    """Return (physical VMEM bytes per core, TensorCores sharing the grid, kind)."""
    kind = ""
    try:
        kind = jax.devices()[0].device_kind.lower()
    except Exception:
        pass
    is_v7 = "v7" in kind
    vmem = (64 if is_v7 else 128) * 1024 * 1024
    try:
        info = pltpu.get_tpu_info()
        vmem = int(getattr(info, "vmem_capacity_bytes", vmem))
    except Exception:
        pass
    num_tc = 2 if is_v7 else 1
    return vmem, num_tc, kind


def _pick_batch_tile(n, per_sample_bytes, target_bytes, num_tc):
    """Largest divisor of n whose block stays under `target_bytes`.

    On multi-TensorCore chips prefer a grid length that is a multiple of the
    core count (ideally >= 2 steps per core for pipeline ramp).  On single-TC
    chips (v5e/v6e) just take the largest block that fits — extra grid steps
    only add per-step overhead.
    """
    divisors = [d for d in range(1, n + 1) if n % d == 0]
    fits = [d for d in divisors if d * per_sample_bytes <= target_bytes] or [1]
    best = max(fits)
    if num_tc > 1:
        ramp = [d for d in fits if (n // d) % num_tc == 0 and (n // d) >= 2 * num_tc]
        even = [d for d in fits if (n // d) % num_tc == 0]
        if ramp:
            best = max(ramp)
        elif even:
            best = max(even)
    return best


def lin_forward(x_nchw, rho, gamma, beta, eps=1e-5):
    """x_nchw: (N, C, H, W); rho/gamma/beta: (1, C, 1, 1). Returns (N, C, H, W)."""
    n, c, h, w = x_nchw.shape
    hw = h * w
    x = x_nchw.reshape(n, c, hw)  # keep native dtype through the DMA

    # Pack the three per-channel params into a single f32 operand (3, C, 1).
    params = jnp.stack(
        [rho.reshape(c, 1), gamma.reshape(c, 1), beta.reshape(c, 1)], axis=0
    ).astype(jnp.float32)

    phys_vmem, num_tc, kind = _tpu_caps()
    is_v7 = "v7" in kind

    itemsize = jnp.dtype(x.dtype).itemsize
    per_sample_bytes = c * hw * itemsize
    # ~6 MiB blocks on v7x (64 MiB VMEM), ~8 MiB on v5e/v6e (128 MiB VMEM):
    # keeps the ~0.35us per-step overhead well under 5-7% of the per-block DMA.
    target_bytes = (6 if is_v7 else 8) * 1024 * 1024
    batch_tile = _pick_batch_tile(n, per_sample_bytes, target_bytes, num_tc)
    grid = (n // batch_tile,)

    # Explicit VMEM budget: double-buffered input + output blocks, params, plus
    # slack for compiler scratch / stats.  Capped at 3/4 of physical VMEM so we
    # never hand the compiler the entire 64 MiB on v7x with zero headroom.
    block_bytes = batch_tile * per_sample_bytes
    need = 4 * block_bytes + 2 * (3 * c * 4) + (4 << 20)
    cap = (phys_vmem * 3) // 4
    vmem_bytes = int(max(16 << 20, min(cap, need)))

    kernel = functools.partial(lin_kernel, eps=eps)

    out = pl.pallas_call(
        kernel,
        out_shape=jax.ShapeDtypeStruct((n, c, hw), x.dtype),
        grid_spec=pltpu.PrefetchScalarGridSpec(
            num_scalar_prefetch=0,
            grid=grid,
            in_specs=[
                pl.BlockSpec((batch_tile, c, hw), lambda i: (i, 0, 0)),  # x samples
                pl.BlockSpec((3, c, 1), lambda i: (0, 0, 0)),            # packed params
            ],
            out_specs=pl.BlockSpec((batch_tile, c, hw), lambda i: (i, 0, 0)),
        ),
        compiler_params=pltpu.CompilerParams(
            dimension_semantics=("parallel",),
            vmem_limit_bytes=vmem_bytes,
        ),
    )(x, params)

    return out.reshape(n, c, h, w)


def lin_reference(x, rho, gamma, beta, eps=1e-5):
    """Pure-JAX reference matching the PyTorch module (unbiased variance)."""
    n, c, h, w = x.shape
    hw = h * w
    xf = x.astype(jnp.float32)
    in_mean = jnp.mean(xf, axis=(2, 3), keepdims=True)
    in_var = jnp.sum((xf - in_mean) ** 2, axis=(2, 3), keepdims=True) / (hw - 1)
    out_in = (xf - in_mean) / jnp.sqrt(in_var + eps)
    ln_mean = jnp.mean(xf, axis=(1, 2, 3), keepdims=True)
    ln_var = jnp.sum((xf - ln_mean) ** 2, axis=(1, 2, 3), keepdims=True) / (c * hw - 1)
    out_ln = (xf - ln_mean) / jnp.sqrt(ln_var + eps)
    out = rho * out_in + (1.0 - rho) * out_ln
    return (out * gamma + beta).astype(x.dtype)


if __name__ == "__main__":
    key = jax.random.PRNGKey(0)
    N, C, H, W = 2, 4, 16, 16
    kx, kr, kg, kb, kx2 = jax.random.split(key, 5)
    x = jax.random.normal(kx, (N, C, H, W), dtype=jnp.float32)

    # Deterministic parameter init matching LIN.__init__ fills.
    rho = jnp.zeros((1, C, 1, 1), dtype=jnp.float32)
    gamma = jnp.ones((1, C, 1, 1), dtype=jnp.float32)
    beta = jnp.zeros((1, C, 1, 1), dtype=jnp.float32)

    out = jax.block_until_ready(lin_forward(x, rho, gamma, beta))
    ref = lin_reference(x, rho, gamma, beta)
    assert out.shape == (N, C, H, W)
    assert jnp.allclose(out, ref, atol=1e-4, rtol=1e-5), "mismatch vs reference (init params)"

    # Non-trivial rho/gamma/beta to exercise the full mix path.
    rho2 = jax.random.uniform(kr, (1, C, 1, 1), dtype=jnp.float32)
    gamma2 = 1.0 + 0.1 * jax.random.normal(kg, (1, C, 1, 1), dtype=jnp.float32)
    beta2 = 0.1 * jax.random.normal(kb, (1, C, 1, 1), dtype=jnp.float32)
    out2 = jax.block_until_ready(lin_forward(x, rho2, gamma2, beta2))
    ref2 = lin_reference(x, rho2, gamma2, beta2)
    assert jnp.allclose(out2, ref2, atol=1e-4, rtol=1e-5), "mismatch vs reference (random params)"

    # Non-128-aligned spatial size (7x7 = 49 lanes): reductions must ignore pad
    # lanes (per-review correctness check for masked lane handling).
    x3 = jax.random.normal(kx2, (N, C, 7, 7), dtype=jnp.float32)
    out3 = jax.block_until_ready(lin_forward(x3, rho2, gamma2, beta2))
    ref3 = lin_reference(x3, rho2, gamma2, beta2)
    assert jnp.allclose(out3, ref3, atol=1e-4, rtol=1e-5), "mismatch vs reference (7x7 spatial)"

    print("KERNEL_OK")
</pallas_src>

<mosaic_0001>
module attributes {stable_mosaic.version = 11 : i64} {
  func.func @lin_kernel(%arg0: i32, %arg1: memref<2x4x256xf32, #tpu.memory_space<vmem>>, %arg2: memref<3x4x1xf32, #tpu.memory_space<vmem>>, %arg3: memref<2x4x256xf32, #tpu.memory_space<vmem>>) attributes {dimension_semantics = [#tpu.dimension_semantics<parallel>], iteration_bounds = array<i64: 1>, scalar_prefetch = 0 : i64, scratch_operands = 0 : i64, tpu.core_type = #tpu.core_type<tc>, window_params = [{transform_indices = @transform_0, window_bounds = array<i64: 2, 4, 256>}, {pipeline_mode = #tpu.pipeline_mode<synchronous>, transform_indices = @transform_1, window_bounds = array<i64: 3, 4, 1>}, {transform_indices = @transform_2, window_bounds = array<i64: 2, 4, 256>}]} {
    %c0 = arith.constant 0 : index
    %c0_0 = arith.constant 0 : index
    %c0_1 = arith.constant 0 : index
    %0 = vector.load %arg2[%c0, %c0_0, %c0_1] : memref<3x4x1xf32, #tpu.memory_space<vmem>>, vector<1x4x1xf32>
    %1 = vector.shape_cast %0 : vector<1x4x1xf32> to vector<4x1xf32>
    %c1 = arith.constant 1 : index
    %c0_2 = arith.constant 0 : index
    %c0_3 = arith.constant 0 : index
    %2 = vector.load %arg2[%c1, %c0_2, %c0_3] : memref<3x4x1xf32, #tpu.memory_space<vmem>>, vector<1x4x1xf32>
    %3 = vector.shape_cast %2 : vector<1x4x1xf32> to vector<4x1xf32>
    %c2 = arith.constant 2 : index
    %c0_4 = arith.constant 0 : index
    %c0_5 = arith.constant 0 : index
    %4 = vector.load %arg2[%c2, %c0_4, %c0_5] : memref<3x4x1xf32, #tpu.memory_space<vmem>>, vector<1x4x1xf32>
    %5 = vector.shape_cast %4 : vector<1x4x1xf32> to vector<4x1xf32>
    %c0_6 = arith.constant 0 : index
    %c0_7 = arith.constant 0 : index
    %c0_8 = arith.constant 0 : index
    %6 = vector.load %arg1[%c0_6, %c0_7, %c0_8] : memref<2x4x256xf32, #tpu.memory_space<vmem>>, vector<2x4x256xf32>
    %cst = arith.constant dense<0.000000e+00> : vector<2x4xf32>
    %7 = vector.multi_reduction <add>, %6, %cst [2] : vector<2x4x256xf32> to vector<2x4xf32>
    %8 = vector.shape_cast %7 : vector<2x4xf32> to vector<2x4x1xf32>
    %cst_9 = arith.constant 2.560000e+02 : f32
    %9 = vector.broadcast %cst_9 : f32 to vector<2x4x1xf32>
    %10 = arith.divf %8, %9 : vector<2x4x1xf32>
    %c0_10 = arith.constant 0 : index
    %c0_11 = arith.constant 0 : index
    %c0_12 = arith.constant 0 : index
    %11 = vector.load %arg1[%c0_10, %c0_11, %c0_12] : memref<2x4x256xf32, #tpu.memory_space<vmem>>, vector<2x4x256xf32>
    %12 = vector.broadcast %10 : vector<2x4x1xf32> to vector<2x4x256xf32>
    %13 = arith.subf %11, %12 : vector<2x4x256xf32>
    %14 = arith.mulf %13, %13 : vector<2x4x256xf32>
    %cst_13 = arith.constant dense<0.000000e+00> : vector<2x4xf32>
    %15 = vector.multi_reduction <add>, %14, %cst_13 [2] : vector<2x4x256xf32> to vector<2x4xf32>
    %16 = vector.shape_cast %15 : vector<2x4xf32> to vector<2x4x1xf32>
    %cst_14 = arith.constant 2.550000e+02 : f32
    %17 = vector.broadcast %cst_14 : f32 to vector<2x4x1xf32>
    %18 = arith.divf %16, %17 : vector<2x4x1xf32>
    %cst_15 = arith.constant dense<0.000000e+00> : vector<2x1xf32>
    %19 = vector.multi_reduction <add>, %10, %cst_15 [1] : vector<2x4x1xf32> to vector<2x1xf32>
    %20 = vector.shape_cast %19 : vector<2x1xf32> to vector<2x1x1xf32>
    %cst_16 = arith.constant 4.000000e+00 : f32
    %21 = vector.broadcast %cst_16 : f32 to vector<2x1x1xf32>
    %22 = arith.divf %20, %21 : vector<2x1x1xf32>
    %23 = vector.broadcast %22 : vector<2x1x1xf32> to vector<2x4x1xf32>
    %24 = arith.subf %10, %23 : vector<2x4x1xf32>
    %25 = arith.mulf %24, %24 : vector<2x4x1xf32>
    %cst_17 = arith.constant 2.560000e+02 : f32
    %26 = vector.broadcast %cst_17 : f32 to vector<2x4x1xf32>
    %27 = arith.mulf %26, %25 : vector<2x4x1xf32>
    %28 = arith.addf %16, %27 : vector<2x4x1xf32>
    %cst_18 = arith.constant dense<0.000000e+00> : vector<2x1xf32>
    %29 = vector.multi_reduction <add>, %28, %cst_18 [1] : vector<2x4x1xf32> to vector<2x1xf32>
    %30 = vector.shape_cast %29 : vector<2x1xf32> to vector<2x1x1xf32>
    %cst_19 = arith.constant 1.023000e+03 : f32
    %31 = vector.broadcast %cst_19 : f32 to vector<2x1x1xf32>
    %32 = arith.divf %30, %31 : vector<2x1x1xf32>
    %cst_20 = arith.constant 9.99999974E-6 : f32
    %33 = vector.broadcast %cst_20 : f32 to vector<2x4x1xf32>
    %34 = arith.addf %18, %33 : vector<2x4x1xf32>
    %35 = math.rsqrt %34 : vector<2x4x1xf32>
    %cst_21 = arith.constant 9.99999974E-6 : f32
    %36 = vector.broadcast %cst_21 : f32 to vector<2x1x1xf32>
    %37 = arith.addf %32, %36 : vector<2x1x1xf32>
    %38 = math.rsqrt %37 : vector<2x1x1xf32>
    %39 = vector.shape_cast %1 : vector<4x1xf32> to vector<1x4x1xf32>
    %40 = vector.broadcast %39 : vector<1x4x1xf32> to vector<2x4x1xf32>
    %41 = arith.mulf %40, %35 : vector<2x4x1xf32>
    %cst_22 = arith.constant 1.000000e+00 : f32
    %42 = vector.broadcast %cst_22 : f32 to vector<4x1xf32>
    %43 = arith.subf %42, %1 : vector<4x1xf32>
    %44 = vector.shape_cast %43 : vector<4x1xf32> to vector<1x4x1xf32>
    %45 = vector.broadcast %44 : vector<1x4x1xf32> to vector<2x4x1xf32>
    %46 = vector.broadcast %38 : vector<2x1x1xf32> to vector<2x4x1xf32>
    %47 = arith.mulf %45, %46 : vector<2x4x1xf32>
    %48 = arith.addf %41, %47 : vector<2x4x1xf32>
    %49 = vector.shape_cast %1 : vector<4x1xf32> to vector<1x4x1xf32>
    %50 = vector.broadcast %49 : vector<1x4x1xf32> to vector<2x4x1xf32>
    %51 = arith.mulf %50, %10 : vector<2x4x1xf32>
    %52 = arith.mulf %51, %35 : vector<2x4x1xf32>
    %cst_23 = arith.constant 1.000000e+00 : f32
    %53 = vector.broadcast %cst_23 : f32 to vector<4x1xf32>
    %54 = arith.subf %53, %1 : vector<4x1xf32>
    %55 = vector.shape_cast %54 : vector<4x1xf32> to vector<1x4x1xf32>
    %56 = vector.broadcast %55 : vector<1x4x1xf32> to vector<2x4x1xf32>
    %57 = vector.broadcast %22 : vector<2x1x1xf32> to vector<2x4x1xf32>
    %58 = arith.mulf %56, %57 : vector<2x4x1xf32>
    %59 = vector.broadcast %38 : vector<2x1x1xf32> to vector<2x4x1xf32>
    %60 = arith.mulf %58, %59 : vector<2x4x1xf32>
    %61 = arith.addf %52, %60 : vector<2x4x1xf32>
    %62 = vector.shape_cast %3 : vector<4x1xf32> to vector<1x4x1xf32>
    %63 = vector.broadcast %62 : vector<1x4x1xf32> to vector<2x4x1xf32>
    %64 = arith.mulf %63, %48 : vector<2x4x1xf32>
    %65 = vector.shape_cast %3 : vector<4x1xf32> to vector<1x4x1xf32>
    %66 = vector.broadcast %65 : vector<1x4x1xf32> to vector<2x4x1xf32>
    %67 = arith.mulf %66, %61 : vector<2x4x1xf32>
    %68 = vector.shape_cast %5 : vector<4x1xf32> to vector<1x4x1xf32>
    %69 = vector.broadcast %68 : vector<1x4x1xf32> to vector<2x4x1xf32>
    %70 = arith.subf %69, %67 : vector<2x4x1xf32>
    %c0_24 = arith.constant 0 : index
    %c0_25 = arith.constant 0 : index
    %c0_26 = arith.constant 0 : index
    %71 = vector.load %arg1[%c0_24, %c0_25, %c0_26] : memref<2x4x256xf32, #tpu.memory_space<vmem>>, vector<2x4x256xf32>
    %72 = vector.broadcast %64 : vector<2x4x1xf32> to vector<2x4x256xf32>
    %73 = arith.mulf %71, %72 : vector<2x4x256xf32>
    %74 = vector.broadcast %70 : vector<2x4x1xf32> to vector<2x4x256xf32>
    %75 = arith.addf %73, %74 : vector<2x4x256xf32>
    %c0_27 = arith.constant 0 : index
    %c0_28 = arith.constant 0 : index
    %c0_29 = arith.constant 0 : index
    %76 = vector.load %arg3[%c0_27, %c0_28, %c0_29] : memref<2x4x256xf32, #tpu.memory_space<vmem>>, vector<2x4x256xf32>
    tpu.vector_store %arg3[%c0_27, %c0_28, %c0_29], %75 {strides = array<i32>} : memref<2x4x256xf32, #tpu.memory_space<vmem>>, vector<2x4x256xf32>,
    return
  }
  func.func @transform_0(%arg0: i32) -> (i32, i32, i32) {
    %c0_i32 = arith.constant 0 : i32
    %c0_i32_0 = arith.constant 0 : i32
    %c0_i32_1 = arith.constant 0 : i32
    return %arg0, %c0_i32, %c0_i32_0 : i32, i32, i32
  }
  func.func @transform_1(%arg0: i32) -> (i32, i32, i32) {
    %c0_i32 = arith.constant 0 : i32
    %c0_i32_0 = arith.constant 0 : i32
    %c0_i32_1 = arith.constant 0 : i32
    %c0_i32_2 = arith.constant 0 : i32
    return %c0_i32, %c0_i32_0, %c0_i32_1 : i32, i32, i32
  }
  func.func @transform_2(%arg0: i32) -> (i32, i32, i32) {
    %c0_i32 = arith.constant 0 : i32
    %c0_i32_0 = arith.constant 0 : i32
    %c0_i32_1 = arith.constant 0 : i32
    return %arg0, %c0_i32, %c0_i32_0 : i32, i32, i32
  }
}

</mosaic_0001>

<bundles_post_ra>
// kernel: tpu_custom_call.1
= control target key start
LH: loop header
LB: loop body
LE: loop exit
PB: predicated region body
PF: predicated region fallthrough
CT: control target
= control target key end

     0   :  { %7 = vsyncpa [#allocation3], 0  ;;  %s390_s0 = inlined_call_operand.hbm [shape: f32[2,4,256], index: 0, kind: input, shape index: {}]   ;;  %s391_s1 = inlined_call_operand.vmem [shape: f32[3,4,1], index: 1, kind: input, shape index: {}]   ;;  %s392_s2 = inlined_call_operand.hbm [shape: f32[2,4,256], index: 2, kind: output, shape index: {}]  }
   0x1   :  { %8 = vsyncpa [#allocation4], 0  ;;  %s302_s9 = smov [#allocation2]  }
   0x2   :  { %s14_s10 = sshll.u32 %s302_s9, 4  ;;  %s15_s10 = int_to_ptr.vmem [resolvable:$true] %s14_s10 }
   0x3   :  { %s266_s11 = scalar_lea.vmem %s15_s10, 256  ;;  %p271_p1 = scmp.lt.s32.totalorder %s15_s10, %s15_s10 }
   0x4   :  { %p267_p0 = scmp.ne.s32.totalorder %s15_s10, %s266_s11  ;;  %p272_p2 = scmp.lt.s32.totalorder %s266_s11, %s266_s11 }
   0x6   :  { %p273_p3 = por %p272_p2, %p271_p1 }
   0x8   :  { %p274_p4 = pnand %p273_p3, %p267_p0 }
   0xa   :  { %277 = shalt.err (!%p274_p4)
}
   0xb   :  { %s303_s12 = smov 128   ;;  %s304_s13 = smov 8  }
   0xc   :  { %20 = dma.hbm_to_vmem [thread:$0]  %s390_s0, 256, %s15_s10, [#allocation3], %s303_s12, %s303_s12, %s304_s13  }
   0xd   :  { %298 = dma.done.wait [#allocation3], 256  }
   0xe   :  { %299 = vsyncadd [#allocation3], 4294967040  ;;  %vm39_vm0 = vcmask 1043456   ;;  %v329_v0 = vld [vmem:[#allocation2] sm:$0xff]  ;;  %v331_v1 = vld [vmem:[#allocation2 + $0x8] sm:$0xff]  ;;  %v58_v12 = vlaneseq  ;;  %v306_v34 = vmov 0  }
   0xf   :  { %v35_v2 = vcombine.high %v329_v0, %v329_v0  ;;  %v40_v3 = vsel %vm39_vm0, %v329_v0, 0.0  ;;  %v36_v4 = vcombine.high %v331_v1, %v331_v1  ;;  %v45_v6 = vsel %vm39_vm0, %v331_v1, 0.0  ;;  %246 = vset.pattern.permute.xlu0 %v306_v34  ;;  %247 = vset.pattern.permute.xlu1 %v306_v34  ;;  %v238_v34 = vld [vmem:[%s391_s1 + $0x4] sm:$0xf] }
  0x10   :  { %v305_v10 = vmov 839922192   ;;  %v59_v14 = vshrl.u32 %v58_v12, 7 }
  0x11   :  { %v41_v5 = vsel %vm39_vm0, %v35_v2, 0.0  ;;  %v46_v7 = vsel %vm39_vm0, %v36_v4, 0.0  ;;  %v56_v11 = vunpack.c.l.s4 %v305_v10 }
  0x12   :  { %v42_v8 = vadd.f32 %v41_v5, %v40_v3  ;;  %v47_v9 = vadd.f32 %v46_v7, %v45_v6 }
  0x13   :  { %v57_v13 = vunpack.c.0.s8 %v56_v11 }
  0x14   :  { %43 = vadd.xlane.f32.xlu0 %v42_v8 }
  0x15   :  { %v343_v15 = vsub.s32 %v57_v13, %v59_v14 }
  0x18   :  { %48 = vadd.xlane.f32.xlu0 %v47_v9 }
  0x9d   :  { %v44_v16 = vpop.xlane.xlu0 %43 }
  0x9e   :  { %v345_v17 = vmul.f32 0.00390625, %v44_v16 }
  0xa0   :  { %v61_v18 = vrot.slane %v345_v17, %v343_v15  ;;  %v94_v35 = vsel %vm39_vm0, %v345_v17, 0.0 }
  0xa1   :  { %v49_v19 = vpop.xlane.xlu0 %48  ;;  %v95_v36 = vrot.slane %v94_v35, 4 }
  0xa2   :  { %v349_v20 = vmul.f32 0.00390625, %v49_v19  ;;  %v71_v21 = vsub.f32 %v329_v0, %v61_v18 }
  0xa3   :  { %v96_v38 = vadd.f32 %v95_v36, %v94_v35 }
  0xa4   :  { %v73_v22 = vmul.f32 %v71_v21, %v71_v21  ;;  %v68_v23 = vrot.slane %v349_v20, %v343_v15  ;;  %v101_v37 = vsel %vm39_vm0, %v349_v20, 0.0 }
  0xa5   :  { %v102_v39 = vrot.slane %v101_v37, 4  ;;  %v97_v41 = vrot.slane %v96_v38, 2 }
  0xa6   :  { %v77_v24 = vcombine.high %v73_v22, %v73_v22  ;;  %v72_v25 = vsub.f32 %v331_v1, %v68_v23  ;;  %v81_v26 = vsel %vm39_vm0, %v73_v22, 0.0 }
  0xa7   :  { %v103_v40 = vadd.f32 %v102_v39, %v101_v37  ;;  %v98_v42 = vadd.f32 %v97_v41, %v96_v38 }
  0xa8   :  { %v82_v27 = vsel %vm39_vm0, %v77_v24, 0.0  ;;  %v74_v28 = vmul.f32 %v72_v25, %v72_v25  ;;  %v26_v24 = vld [vmem:[%s391_s1] sm:$0xf] }
  0xa9   :  { %v83_v29 = vadd.f32 %v82_v27, %v81_v26  ;;  %v104_v43 = vrot.slane %v103_v40, 2  ;;  %v99_v44 = vrot.slane %v98_v42, 1  ;;  %v146_v25 = vsub.f32 1.0, %v26_v24 }
  0xaa   :  { %v78_v30 = vcombine.high %v74_v28, %v74_v28  ;;  %v86_v31 = vsel %vm39_vm0, %v74_v28, 0.0  ;;  %v152_v39 = vmul.f32 %v349_v20, %v26_v24 }
  0xab   :  { %84 = vadd.xlane.f32.xlu1 %v83_v29  ;;  %v105_v45 = vadd.f32 %v104_v43, %v103_v40  ;;  %v100_v46 = vadd.f32 %v99_v44, %v98_v42 }
  0xac   :  { %v87_v32 = vsel %vm39_vm0, %v78_v30, 0.0  ;;  %v151_v30 = vmul.f32 %v345_v17, %v26_v24 }
  0xad   :  { %v88_v33 = vadd.f32 %v87_v32, %v86_v31  ;;  %v106_v47 = vrot.slane %v105_v45, 1  ;;  %v109_v48 = vmul.f32 0.25, %v100_v46 }
  0xaf   :  { %89 = vadd.xlane.f32.xlu1 %v88_v33  ;;  %v107_v49 = vadd.f32 %v106_v47, %v105_v45  ;;  %v111_v50 = vsub.f32 %v345_v17, %v109_v48  ;;  %v155_v27 = vmul.f32 %v146_v25, %v109_v48 }
  0xb1   :  { %v110_v51 = vmul.f32 0.25, %v107_v49  ;;  %v113_v52 = vmul.f32 %v111_v50, %v111_v50  ;;  %v239_v49 = vld [vmem:[%s391_s1 + $0x8] sm:$0xf]  ;;  %s307_s1 = smov [#allocation5]  }
  0xb2   :  { %s226_s21 = sshll.u32 %s307_s1, 4  ;;  %s227_s21 = int_to_ptr.vmem [resolvable:$true] %s226_s21 }
  0xb3   :  { %v112_v53 = vsub.f32 %v349_v20, %v110_v51  ;;  %v115_v54 = vmul.f32 256.0, %v113_v52  ;;  %v156_v35 = vmul.f32 %v146_v25, %v110_v51  ;;  %s278_s22 = scalar_lea.vmem %s227_s21, 256  ;;  %p283_p6 = scmp.lt.s32.totalorder %s227_s21, %s227_s21 }
  0xb4   :  { %p279_p5 = scmp.ne.s32.totalorder %s227_s21, %s278_s22  ;;  %p284_p7 = scmp.lt.s32.totalorder %s278_s22, %s278_s22 }
  0xb5   :  { %v114_v55 = vmul.f32 %v112_v53, %v112_v53 }
  0xb6   :  { %p285_p8 = por %p284_p7, %p283_p6 }
  0xb7   :  { %v116_v59 = vmul.f32 256.0, %v114_v55 }
  0xb8   :  { %p286_p9 = pnand %p285_p8, %p279_p5 }
 0x134   :  { %v85_v56 = vpop.xlane.xlu1 %84 }
 0x135   :  { %v117_v57 = vadd.f32 %v115_v54, %v85_v56  ;;  %v92_v5 = vmul.f32 0.003921569, %v85_v56 }
 0x137   :  { %v119_v58 = vsel %vm39_vm0, %v117_v57, 0.0  ;;  %v136_v12 = vadd.f32 1e-05, %v92_v5 }
 0x138   :  { %v120_v60 = vrot.slane %v119_v58, 4  ;;  %v90_v61 = vpop.xlane.xlu1 %89 }
 0x139   :  { %v118_v62 = vadd.f32 %v116_v59, %v90_v61  ;;  %v93_v10 = vmul.f32 0.003921569, %v90_v61  ;;  %250 = vrsqrt.f32 %v136_v12 }
 0x13a   :  { %v121_v63 = vadd.f32 %v120_v60, %v119_v58 }
 0x13b   :  { %v126_v2 = vsel %vm39_vm0, %v118_v62, 0.0  ;;  %v137_v18 = vadd.f32 1e-05, %v93_v10 }
 0x13c   :  { %v122_v3 = vrot.slane %v121_v63, 2  ;;  %v127_v4 = vrot.slane %v126_v2, 4 }
 0x13e   :  { %v123_v6 = vadd.f32 %v122_v3, %v121_v63  ;;  %v128_v7 = vadd.f32 %v127_v4, %v126_v2 }
 0x140   :  { %v124_v8 = vrot.slane %v123_v6, 1  ;;  %v129_v9 = vrot.slane %v128_v7, 2 }
 0x142   :  { %v125_v11 = vadd.f32 %v124_v8, %v123_v6  ;;  %v130_v13 = vadd.f32 %v129_v9, %v128_v7 }
 0x144   :  { %v134_v14 = vmul.f32 0.0009775171, %v125_v11  ;;  %v131_v16 = vrot.slane %v130_v13, 1 }
 0x146   :  { %v140_v19 = vadd.f32 1e-05, %v134_v14  ;;  %v132_v21 = vadd.f32 %v131_v16, %v130_v13  ;;  %v251_v26 = vpop.eup %250 }
 0x147   :  { %v144_v31 = vmul.f32 %v251_v26, %v26_v24  ;;  %v153_v37 = vmul.f32 %v251_v26, %v151_v30 }
 0x148   :  { %252 = vrsqrt.f32 %v140_v19  ;;  %v135_v22 = vmul.f32 0.0009775171, %v132_v21 }
 0x149   :  { %254 = vrsqrt.f32 %v137_v18 }
 0x14a   :  { %v141_v23 = vadd.f32 1e-05, %v135_v22 }
 0x14c   :  { %256 = vrsqrt.f32 %v141_v23 }
 0x155   :  { %v253_v28 = vpop.eup %252 }
 0x156   :  { %v255_v29 = vpop.eup %254  ;;  %v147_v32 = vmul.f32 %v253_v28, %v146_v25  ;;  %v157_v33 = vmul.f32 %v253_v28, %v155_v27 }
 0x157   :  { %v145_v40 = vmul.f32 %v255_v29, %v26_v24  ;;  %v154_v45 = vmul.f32 %v255_v29, %v152_v39 }
 0x158   :  { %v149_v36 = vadd.f32 %v147_v32, %v144_v31  ;;  %v159_v43 = vadd.f32 %v157_v33, %v153_v37 }
 0x159   :  { %v257_v38 = vpop.eup %256 }
 0x15a   :  { %v161_v41 = vmul.f32 %v238_v34, %v149_v36  ;;  %v148_v42 = vmul.f32 %v257_v38, %v146_v25  ;;  %v158_v44 = vmul.f32 %v257_v38, %v156_v35  ;;  %v163_v47 = vmul.f32 %v238_v34, %v159_v43 }
 0x15c   :  { %169 = vperm.xlu0 %246, %v161_v41   ;;  %v150_v17 = vadd.f32 %v148_v42, %v145_v40  ;;  %v160_v48 = vadd.f32 %v158_v44, %v154_v45  ;;  %v165_v50 = vsub.f32 %v239_v49, %v163_v47 }
 0x15e   :  { %v162_v46 = vmul.f32 %v238_v34, %v150_v17  ;;  %v164_v51 = vmul.f32 %v238_v34, %v160_v48 }
 0x160   :  { %173 = vperm.xlu1 %247, %v162_v46   ;;  %v166_v20 = vsub.f32 %v239_v49, %v164_v51 }
 0x164   :  { %195 = vperm.xlu1 %247, %v165_v50  }
 0x168   :  { %199 = vperm.xlu1 %247, %v166_v20  }
 0x1d7   :  { %v170_v52 = vpop.permute.xlu0 %169 }
 0x1d8   :  { %v181_v54 = vrot.slane %v170_v52, %v343_v15 }
 0x1da   :  { %v191_v56 = vmul.f32 %v181_v54, %v329_v0 }
 0x1db   :  { %v174_v53 = vpop.permute.xlu1 %173 }
 0x1dc   :  { %v188_v57 = vrot.slane %v174_v53, %v343_v15 }
 0x1de   :  { %v192_v61 = vmul.f32 %v188_v57, %v331_v1 }
 0x1df   :  { %v196_v55 = vpop.permute.xlu1 %195 }
 0x1e0   :  { %v207_v58 = vrot.slane %v196_v55, %v343_v15 }
 0x1e2   :  { %v217_v59 = vadd.f32 %v207_v58, %v191_v56 }
 0x1e3   :  { %v200_v60 = vpop.permute.xlu1 %199 }
 0x1e4   :  { %219 = vst [vmem:[#allocation5] sm:$0xff] %v217_v59  ;;  %v214_v62 = vrot.slane %v200_v60, %v343_v15 }
 0x1e6   :  { %v218_v63 = vadd.f32 %v214_v62, %v192_v61 }
 0x1e8   :  { %220 = vst [vmem:[#allocation5 + $0x8] sm:$0xff] %v218_v63 }
 0x1e9   :  { %289 = shalt.err (!%p286_p9)
}
 0x1ea   :  { %232 = dma.vmem_to_hbm [thread:$0]  %s227_s21, 256, %s392_s2, [#allocation4], %s303_s12, %s303_s12, %s304_s13  }
 0x1eb   :  { %300 = dma.done.wait [#allocation4], 256  }
 0x1ec   :  { %301 = vsyncadd [#allocation4], 4294967040 }
 0x1ed   :  { %236 = vsyncpa [#allocation3], 1 }
 0x1ee   :  { %237 = vsyncpa [#allocation4], 1 }

</bundles_post_ra>
